<compile_context>
chip_gen: v7x
topology: tpu7x:2x2x1
jax: 0.10.0
libtpu: 0.0.40
codegen_flags: <defaults>
</compile_context>

<pallas_src>
import functools

import jax
import jax.numpy as jnp
from jax.experimental import pallas as pl
from jax.experimental.pallas import tpu as pltpu

_LANE = 128
_NEG = -1e30  # finite "masked" sentinel


def _round_up(x, m):
    return ((x + m - 1) // m) * m


def _ce_kernel(labels_ref, logits_ref, out_ref, m_sc, l_sc, p_sc, *,
               n_rows, n_classes):
    # labels_ref: (TN, 1) int32     logits_ref: (TN, TC)
    # out_ref:    (1, 8, 128) f32   per-row-tile partial loss sum (broadcast)
    # m_sc/l_sc/p_sc: (TN, 1) f32   running max / scaled exp-sum / picked logit
    i = pl.program_id(0)            # row tile (parallel)
    j = pl.program_id(1)            # class tile (reduction, innermost)
    nj = pl.num_programs(1)
    tn, tc = logits_ref.shape

    @pl.when(j == 0)
    def _():
        m_sc[...] = jnp.full_like(m_sc, _NEG)   # finite sentinel (not -inf)
        l_sc[...] = jnp.zeros_like(l_sc)
        p_sc[...] = jnp.zeros_like(p_sc)

    # Tile-local label coordinate + reusable local lane iota (no global-col add).
    lbl_local = labels_ref[...] - j * tc                              # (TN, 1)
    local_col = jax.lax.broadcasted_iota(jnp.int32, (tn, tc), 1)      # (TN, TC)

    def update(logits):
        # Online logsumexp over the class axis.
        blk_max = jnp.max(logits, axis=-1, keepdims=True)             # (TN, 1)
        m_new = jnp.maximum(m_sc[...], blk_max)
        alpha = jnp.exp(m_sc[...] - m_new)
        l_sc[...] = alpha * l_sc[...] + jnp.sum(
            jnp.exp(logits - m_new), axis=-1, keepdims=True)
        m_sc[...] = m_new
        # Gather logits[r, labels[r]] (label lies in exactly one class tile).
        p_sc[...] += jnp.sum(jnp.where(local_col == lbl_local, logits, 0.0),
                             axis=-1, keepdims=True)

    logits = logits_ref[...].astype(jnp.float32)

    if n_classes % tc == 0:
        # No ragged class tile anywhere: no masking work at all.
        update(logits)
    else:
        # Only the last class tile can be ragged; interior tiles skip the mask.
        @pl.when(j < nj - 1)
        def _():
            update(logits)

        @pl.when(j == nj - 1)
        def _():
            valid = local_col < (n_classes - j * tc)
            update(jnp.where(valid, logits, _NEG))

    @pl.when(j == nj - 1)
    def _():
        loss = m_sc[...] + jnp.log(l_sc[...]) - p_sc[...]             # (TN, 1)
        if n_rows % tn != 0:
            # Mask OOB rows of the ragged last row tile before reducing.
            row = jax.lax.broadcasted_iota(jnp.int32, (tn, 1), 0) + i * tn
            loss = jnp.where(row < n_rows, loss, 0.0)
        partial = jnp.sum(loss, axis=0, keepdims=True)                # (1, 1)
        out_ref[...] = jnp.broadcast_to(partial.reshape(1, 1, 1), out_ref.shape)


def ce_loss(labels, logits, *, max_class_tile=2048,
            target_block_bytes=8 * 1024 * 1024):
    """labels: (N,) integer class indices; logits: (N, C) float (f32 or bf16).

    Returns scalar f32 mean cross-entropy (F.cross_entropy default semantics).
    """
    n, c = logits.shape
    labels2d = labels.astype(jnp.int32).reshape(n, 1)
    itemsize = jnp.dtype(logits.dtype).itemsize
    sub = 16 if itemsize < 4 else 8          # bf16 packs 2 rows per sublane

    # Class tile: whole row when it fits (no class mask at all); otherwise a
    # lane-dense multiple-of-128 tile (only the last tile can be ragged).
    max_class_tile = max(_LANE, _round_up(max_class_tile, _LANE))
    tc = c if c <= max_class_tile else max_class_tile

    # Row tile: aim for ~target_block_bytes of logits per block, but bound the
    # per-block element count (<= 2M -> 8 MiB of f32 upcast temporaries) so
    # double-buffered blocks + temps fit comfortably under v7x's 64 MiB VMEM.
    blk_elems = max(sub * _LANE,
                    min(target_block_bytes // itemsize, 2 * 1024 * 1024))
    tn = max(sub, (blk_elems // tc) // sub * sub)
    if n > sub:
        # Guarantee >=2 row tiles so the "parallel" axis can use both cores.
        tn = min(tn, _round_up(pl.cdiv(n, 2), sub))
    if tn >= n:
        tn = n                                # single row tile covering all rows

    grid = (pl.cdiv(n, tn), pl.cdiv(c, tc))

    partials = pl.pallas_call(
        functools.partial(_ce_kernel, n_rows=n, n_classes=c),
        out_shape=jax.ShapeDtypeStruct((grid[0], 8, _LANE), jnp.float32),
        grid_spec=pltpu.PrefetchScalarGridSpec(
            num_scalar_prefetch=0,
            grid=grid,
            in_specs=[
                pl.BlockSpec((tn, 1), lambda i, j: (i, 0)),    # labels
                pl.BlockSpec((tn, tc), lambda i, j: (i, j)),   # logits
            ],
            out_specs=pl.BlockSpec((1, 8, _LANE), lambda i, j: (i, 0, 0)),
            scratch_shapes=[
                pltpu.VMEM((tn, 1), jnp.float32),   # running max m
                pltpu.VMEM((tn, 1), jnp.float32),   # running scaled sum l
                pltpu.VMEM((tn, 1), jnp.float32),   # picked target logit
            ],
        ),
        compiler_params=pltpu.CompilerParams(
            dimension_semantics=("parallel", "arbitrary"),
            vmem_limit_bytes=48 * 1024 * 1024,
        ),
    )(labels2d, logits)

    # reduction='mean': one partial per row tile; single divide by the true N.
    return jnp.sum(partials[:, 0, 0]) / jnp.float32(n)


def _reference_ce(labels, logits):
    logits = logits.astype(jnp.float32)
    logz = jax.nn.logsumexp(logits, axis=-1)
    picked = jnp.take_along_axis(
        logits, labels[:, None].astype(jnp.int32), axis=-1)[:, 0]
    return jnp.mean(logz - picked)


if __name__ == "__main__":
    key = jax.random.PRNGKey(0)
    k1, k2, k3, k4, k5, k6 = jax.random.split(key, 6)

    # Test 1: small shapes consistent with the module demo (N=8, 32 classes).
    N, C = 8, 32
    logits = jax.random.normal(k1, (N, C), dtype=jnp.float32)
    labels = jax.random.randint(k2, (N,), 0, C, dtype=jnp.int32)
    loss = ce_loss(labels, logits)
    jax.block_until_ready(loss)
    ref = _reference_ce(labels, logits)
    assert jnp.allclose(loss, ref, atol=1e-5, rtol=1e-5), (loss, ref)

    # Test 2: non-aligned N and C with class tiling (exercises ragged class tile,
    # ragged row tile, online LSE across class tiles, in-kernel partial sums).
    N2, C2 = 50, 200
    logits2 = jax.random.normal(k3, (N2, C2), dtype=jnp.float32)
    labels2 = jax.random.randint(k4, (N2,), 0, C2, dtype=jnp.int32)
    loss2 = ce_loss(labels2, logits2, max_class_tile=128)
    jax.block_until_ready(loss2)
    ref2 = _reference_ce(labels2, logits2)
    assert jnp.allclose(loss2, ref2, atol=1e-5, rtol=1e-5), (loss2, ref2)

    # Test 3: bf16 logits in HBM, upcast in-kernel, 16-row-aligned tiles.
    N3, C3 = 64, 128
    logits3 = jax.random.normal(k5, (N3, C3), dtype=jnp.bfloat16)
    labels3 = jax.random.randint(k6, (N3,), 0, C3, dtype=jnp.int32)
    loss3 = ce_loss(labels3, logits3)
    jax.block_until_ready(loss3)
    ref3 = _reference_ce(labels3, logits3)
    assert jnp.allclose(loss3, ref3, atol=1e-3, rtol=1e-3), (loss3, ref3)

    print("KERNEL_OK")
</pallas_src>

<mosaic_0001>
module attributes {stable_mosaic.version = 11 : i64} {
  func.func @_ce_kernel(%arg0: i32, %arg1: i32, %arg2: memref<8x1xi32, #tpu.memory_space<vmem>>, %arg3: memref<8x32xf32, #tpu.memory_space<vmem>>, %arg4: memref<1x8x128xf32, #tpu.memory_space<vmem>>, %arg5: memref<8x1xf32, #tpu.memory_space<vmem>>, %arg6: memref<8x1xf32, #tpu.memory_space<vmem>>, %arg7: memref<8x1xf32, #tpu.memory_space<vmem>>) attributes {dimension_semantics = [#tpu.dimension_semantics<parallel>, #tpu.dimension_semantics<arbitrary>], iteration_bounds = array<i64: 1, 1>, scalar_prefetch = 0 : i64, scratch_operands = 3 : i64, tpu.core_type = #tpu.core_type<tc>, window_params = [{transform_indices = @transform_0, window_bounds = array<i64: 8, 1>}, {transform_indices = @transform_1, window_bounds = array<i64: 8, 32>}, {transform_indices = @transform_2, window_bounds = array<i64: 1, 8, 128>}]} {
    %c0_i32 = arith.constant 0 : i32
    %0 = arith.cmpi eq, %arg1, %c0_i32 : i32
    %1 = arith.extui %0 : i1 to i32
    %c0_i32_0 = arith.constant 0 : i32
    %2 = arith.cmpi ne, %1, %c0_i32_0 : i32
    scf.if %2 {
      %cst_23 = arith.constant -1.000000e+30 : f32
      %38 = vector.broadcast %cst_23 : f32 to vector<8x1xf32>
      %c0_24 = arith.constant 0 : index
      %c0_25 = arith.constant 0 : index
      %39 = vector.load %arg5[%c0_24, %c0_25] : memref<8x1xf32, #tpu.memory_space<vmem>>, vector<8x1xf32>
      tpu.vector_store %arg5[%c0_24, %c0_25], %38 {strides = array<i32>} : memref<8x1xf32, #tpu.memory_space<vmem>>, vector<8x1xf32>,
      %cst_26 = arith.constant 0.000000e+00 : f32
      %40 = vector.broadcast %cst_26 : f32 to vector<8x1xf32>
      %c0_27 = arith.constant 0 : index
      %c0_28 = arith.constant 0 : index
      %41 = vector.load %arg6[%c0_27, %c0_28] : memref<8x1xf32, #tpu.memory_space<vmem>>, vector<8x1xf32>
      tpu.vector_store %arg6[%c0_27, %c0_28], %40 {strides = array<i32>} : memref<8x1xf32, #tpu.memory_space<vmem>>, vector<8x1xf32>,
      %cst_29 = arith.constant 0.000000e+00 : f32
      %42 = vector.broadcast %cst_29 : f32 to vector<8x1xf32>
      %c0_30 = arith.constant 0 : index
      %c0_31 = arith.constant 0 : index
      %43 = vector.load %arg7[%c0_30, %c0_31] : memref<8x1xf32, #tpu.memory_space<vmem>>, vector<8x1xf32>
      tpu.vector_store %arg7[%c0_30, %c0_31], %42 {strides = array<i32>} : memref<8x1xf32, #tpu.memory_space<vmem>>, vector<8x1xf32>,
    } else {
    }
    %c0 = arith.constant 0 : index
    %c0_1 = arith.constant 0 : index
    %3 = vector.load %arg2[%c0, %c0_1] : memref<8x1xi32, #tpu.memory_space<vmem>>, vector<8x1xi32>
    %c32_i32 = arith.constant 32 : i32
    %4 = arith.muli %arg1, %c32_i32 : i32
    %5 = vector.broadcast %4 : i32 to vector<8x1xi32>
    %6 = arith.subi %3, %5 : vector<8x1xi32>
    %7 = tpu.iota {dimensions = array<i32: 1>} : vector<8x32xi32>
    %c0_2 = arith.constant 0 : index
    %c0_3 = arith.constant 0 : index
    %8 = vector.load %arg3[%c0_2, %c0_3] : memref<8x32xf32, #tpu.memory_space<vmem>>, vector<8x32xf32>
    %cst = arith.constant dense<0xFF800000> : vector<8xf32>
    %9 = vector.multi_reduction <maximumf>, %8, %cst [1] : vector<8x32xf32> to vector<8xf32>
    %10 = vector.shape_cast %9 : vector<8xf32> to vector<8x1xf32>
    %c0_4 = arith.constant 0 : index
    %c0_5 = arith.constant 0 : index
    %11 = vector.load %arg5[%c0_4, %c0_5] : memref<8x1xf32, #tpu.memory_space<vmem>>, vector<8x1xf32>
    %12 = arith.maximumf %11, %10 : vector<8x1xf32>
    %c0_6 = arith.constant 0 : index
    %c0_7 = arith.constant 0 : index
    %13 = vector.load %arg5[%c0_6, %c0_7] : memref<8x1xf32, #tpu.memory_space<vmem>>, vector<8x1xf32>
    %14 = arith.subf %13, %12 : vector<8x1xf32>
    %15 = math.exp %14 : vector<8x1xf32>
    %c0_8 = arith.constant 0 : index
    %c0_9 = arith.constant 0 : index
    %16 = vector.load %arg6[%c0_8, %c0_9] : memref<8x1xf32, #tpu.memory_space<vmem>>, vector<8x1xf32>
    %17 = arith.mulf %15, %16 : vector<8x1xf32>
    %18 = vector.broadcast %12 : vector<8x1xf32> to vector<8x32xf32>
    %19 = arith.subf %8, %18 : vector<8x32xf32>
    %20 = math.exp %19 : vector<8x32xf32>
    %cst_10 = arith.constant dense<0.000000e+00> : vector<8xf32>
    %21 = vector.multi_reduction <add>, %20, %cst_10 [1] : vector<8x32xf32> to vector<8xf32>
    %22 = vector.shape_cast %21 : vector<8xf32> to vector<8x1xf32>
    %23 = arith.addf %17, %22 : vector<8x1xf32>
    %c0_11 = arith.constant 0 : index
    %c0_12 = arith.constant 0 : index
    %24 = vector.load %arg6[%c0_11, %c0_12] : memref<8x1xf32, #tpu.memory_space<vmem>>, vector<8x1xf32>
    tpu.vector_store %arg6[%c0_11, %c0_12], %23 {strides = array<i32>} : memref<8x1xf32, #tpu.memory_space<vmem>>, vector<8x1xf32>,
    %c0_13 = arith.constant 0 : index
    %c0_14 = arith.constant 0 : index
    %25 = vector.load %arg5[%c0_13, %c0_14] : memref<8x1xf32, #tpu.memory_space<vmem>>, vector<8x1xf32>
    tpu.vector_store %arg5[%c0_13, %c0_14], %12 {strides = array<i32>} : memref<8x1xf32, #tpu.memory_space<vmem>>, vector<8x1xf32>,
    %c0_15 = arith.constant 0 : index
    %c0_16 = arith.constant 0 : index
    %26 = vector.load %arg7[%c0_15, %c0_16] : memref<8x1xf32, #tpu.memory_space<vmem>>, vector<8x1xf32>
    %27 = vector.broadcast %6 : vector<8x1xi32> to vector<8x32xi32>
    %28 = arith.cmpi eq, %7, %27 : vector<8x32xi32>
    %cst_17 = arith.constant 0.000000e+00 : f32
    %29 = vector.broadcast %cst_17 : f32 to vector<8x32xf32>
    %30 = arith.select %28, %8, %29 : vector<8x32xi1>, vector<8x32xf32>
    %cst_18 = arith.constant dense<0.000000e+00> : vector<8xf32>
    %31 = vector.multi_reduction <add>, %30, %cst_18 [1] : vector<8x32xf32> to vector<8xf32>
    %32 = vector.shape_cast %31 : vector<8xf32> to vector<8x1xf32>
    %33 = arith.addf %26, %32 : vector<8x1xf32>
    %c0_19 = arith.constant 0 : index
    %c0_20 = arith.constant 0 : index
    %34 = vector.load %arg7[%c0_19, %c0_20] : memref<8x1xf32, #tpu.memory_space<vmem>>, vector<8x1xf32>
    tpu.vector_store %arg7[%c0_19, %c0_20], %33 {strides = array<i32>} : memref<8x1xf32, #tpu.memory_space<vmem>>, vector<8x1xf32>,
    %c0_i32_21 = arith.constant 0 : i32
    %35 = arith.cmpi eq, %arg1, %c0_i32_21 : i32
    %36 = arith.extui %35 : i1 to i32
    %c0_i32_22 = arith.constant 0 : i32
    %37 = arith.cmpi ne, %36, %c0_i32_22 : i32
    scf.if %37 {
      %c0_23 = arith.constant 0 : index
      %c0_24 = arith.constant 0 : index
      %38 = vector.load %arg5[%c0_23, %c0_24] : memref<8x1xf32, #tpu.memory_space<vmem>>, vector<8x1xf32>
      %c0_25 = arith.constant 0 : index
      %c0_26 = arith.constant 0 : index
      %39 = vector.load %arg6[%c0_25, %c0_26] : memref<8x1xf32, #tpu.memory_space<vmem>>, vector<8x1xf32>
      %40 = math.log %39 : vector<8x1xf32>
      %41 = arith.addf %38, %40 : vector<8x1xf32>
      %c0_27 = arith.constant 0 : index
      %c0_28 = arith.constant 0 : index
      %42 = vector.load %arg7[%c0_27, %c0_28] : memref<8x1xf32, #tpu.memory_space<vmem>>, vector<8x1xf32>
      %43 = arith.subf %41, %42 : vector<8x1xf32>
      %cst_29 = arith.constant dense<0.000000e+00> : vector<1xf32>
      %44 = vector.multi_reduction <add>, %43, %cst_29 [0] : vector<8x1xf32> to vector<1xf32>
      %45 = vector.shape_cast %44 : vector<1xf32> to vector<1x1xf32>
      %46 = vector.shape_cast %45 : vector<1x1xf32> to vector<1x1x1xf32>
      %47 = vector.shape_cast %46 : vector<1x1x1xf32> to vector<1x1x1xf32>
      %48 = vector.broadcast %47 : vector<1x1x1xf32> to vector<1x8x128xf32>
      %c0_30 = arith.constant 0 : index
      %c0_31 = arith.constant 0 : index
      %c0_32 = arith.constant 0 : index
      %49 = vector.load %arg4[%c0_30, %c0_31, %c0_32] : memref<1x8x128xf32, #tpu.memory_space<vmem>>, vector<1x8x128xf32>
      tpu.vector_store %arg4[%c0_30, %c0_31, %c0_32], %48 {strides = array<i32>} : memref<1x8x128xf32, #tpu.memory_space<vmem>>, vector<1x8x128xf32>,
    } else {
    }
    return
  }
  func.func @transform_0(%arg0: i32, %arg1: i32) -> (i32, i32) {
    %c0_i32 = arith.constant 0 : i32
    %c0_i32_0 = arith.constant 0 : i32
    return %arg0, %c0_i32 : i32, i32
  }
  func.func @transform_1(%arg0: i32, %arg1: i32) -> (i32, i32) {
    %c0_i32 = arith.constant 0 : i32
    return %arg0, %arg1 : i32, i32
  }
  func.func @transform_2(%arg0: i32, %arg1: i32) -> (i32, i32, i32) {
    %c0_i32 = arith.constant 0 : i32
    %c0_i32_0 = arith.constant 0 : i32
    %c0_i32_1 = arith.constant 0 : i32
    return %arg0, %c0_i32, %c0_i32_0 : i32, i32, i32
  }
}

</mosaic_0001>

<bundles_post_ra>
// kernel: tpu_custom_call.1
= control target key start
LH: loop header
LB: loop body
LE: loop exit
PB: predicated region body
PF: predicated region fallthrough
CT: control target
= control target key end

     0   :  { %vm27_vm0 = vcmask 261120   ;;  %s184_s0 = inlined_call_operand.vmem [shape: s32[8,1], index: 0, kind: input, shape index: {}]   ;;  %s185_s1 = inlined_call_operand.vmem [shape: f32[8,32], index: 1, kind: input, shape index: {}]   ;;  %s186_s2 = inlined_call_operand.hbm [shape: f32[1,8,128], index: 2, kind: output, shape index: {}]  }
   0x1   :  { %v26_v0 = vld [vmem:[%s185_s1] sm:$0xff] }
   0x2   :  { %7 = vsyncpa [#allocation6], 0  ;;  %v28_v1 = vsel %vm27_vm0, %v26_v0, -inf  ;;  %vm16_vm1 = vcmask 7168   ;;  %v137_v2 = vmov -1e+30   ;;  %v24_v13 = vlaneseq }
   0x3   :  { %29 = vmax.xlane.f32.xlu0 %v28_v1  ;;  %17 = vst.msk [vmem:[#allocation2] sm:$0xff] %vm16_vm1, %v137_v2  ;;  %v138_v3 = vmov 0   ;;  %v20_v4 = vld [vmem:[%s184_s0] sm:$0xff]  ;;  %v139_v5 = vmov 0.0   ;;  %s140_s0 = smov [#allocation5]  }
   0x4   :  { %105 = vset.pattern.permute.xlu0 %v138_v3  ;;  %106 = vset.pattern.permute.xlu1 %v138_v3  ;;  %18 = vst.msk [vmem:[#allocation3] sm:$0xff] %vm16_vm1, %v139_v5  ;;  %19 = vst.msk [vmem:[#allocation4] sm:$0xff] %vm16_vm1, %v139_v5  ;;  %v25_v14 = vand.u32 127, %v24_v13  ;;  %s93_s1 = sshll.u32 %s140_s0, 4  ;;  %s94_s1 = int_to_ptr.vmem [resolvable:$true] %s93_s1 }
   0x5   :  { %55 = vperm.xlu1 %106, %v20_v4   ;;  %s113_s13 = scalar_lea.vmem %s94_s1, 128  ;;  %p118_p1 = scmp.lt.s32.totalorder %s94_s1, %s94_s1 }
   0x6   :  { %p114_p0 = scmp.ne.s32.totalorder %s94_s1, %s113_s13  ;;  %p119_p2 = scmp.lt.s32.totalorder %s113_s13, %s113_s13 }
   0x8   :  { %p120_p3 = por %p119_p2, %p118_p1 }
   0xa   :  { %v31_v6 = vld [vmem:[#allocation2] sm:$0xff]  ;;  %p121_p4 = pnand %p120_p3, %p114_p0 }
   0xb   :  { %v36_v22 = vld [vmem:[#allocation3] sm:$0xff]  ;;  %v53_v26 = vld [vmem:[#allocation4] sm:$0xff] }
  0x84   :  { %v56_v15 = vpop.permute.xlu1 %55 }
  0x85   :  { %vm57_vm2 = vcmp.eq.s32.totalorder %v25_v14, %v56_v15 }
  0x86   :  { %v58_v17 = vsel %vm57_vm2, %v26_v0, 0.0 }
  0x87   :  { %v59_v19 = vsel %vm27_vm0, %v58_v17, 0.0 }
  0x90   :  { %v30_v7 = vpop.xlane.xlu0 %29 }
  0x91   :  { %v32_v8 = vmax.f32 %v31_v6, %v30_v7 }
  0x93   :  { %v33_v9 = vsub.f32 %v31_v6, %v32_v8  ;;  %52 = vst.msk [vmem:[#allocation2] sm:$0xff] %vm16_vm1, %v32_v8  ;;  %40 = vperm.xlu0 %105, %v32_v8  }
  0x95   :  { %v34_v20 = vmul.f32 1.442695, %v33_v9 }
  0x9a   :  { %v67_v32 = vld [vmem:[#allocation2] sm:$0xff] }
 0x112   :  { %v41_v10 = vpop.permute.xlu0 %40 }
 0x113   :  { %v43_v11 = vsub.f32 %v26_v0, %v41_v10 }
 0x115   :  { %v44_v12 = vmul.f32 1.442695, %v43_v11 }
 0x117   :  { %107 = vpow2.f32 %v44_v12 }
 0x118   :  { %109 = vpow2.f32 %v34_v20 }
 0x121   :  { %v108_v16 = vpop.eup %107 }
 0x122   :  { %v46_v18 = vsel %vm27_vm0, %v108_v16, 0.0  ;;  %v110_v21 = vpop.eup %109 }
 0x123   :  { %47 = vadd.xlane.f32.xlu1 %v46_v18  ;;  %v37_v23 = vmul.f32 %v110_v21, %v36_v22 }
 0x127   :  { %60 = vadd.xlane.f32.xlu1 %v59_v19 }
 0x1b0   :  { %v48_v24 = vpop.xlane.xlu1 %47 }
 0x1b1   :  { %v49_v25 = vadd.f32 %v48_v24, %v37_v23 }
 0x1b3   :  { %51 = vst.msk [vmem:[#allocation3] sm:$0xff] %vm16_vm1, %v49_v25 }
 0x1b4   :  { %v61_v27 = vpop.xlane.xlu1 %60 }
 0x1b5   :  { %v62_v28 = vadd.f32 %v61_v27, %v53_v26 }
 0x1b7   :  { %63 = vst.msk [vmem:[#allocation4] sm:$0xff] %vm16_vm1, %v62_v28 }
 0x1ba   :  { %v68_v29 = vld [vmem:[#allocation3] sm:$0xff] }
 0x1bb   :  { %111 = vlog2.f32 %v68_v29 }
 0x1be   :  { %v72_v33 = vld [vmem:[#allocation4] sm:$0xff] }
 0x1c5   :  { %v112_v30 = vpop.eup %111 }
 0x1c6   :  { %v70_v31 = vmul.f32 0.6931472, %v112_v30 }
 0x1c8   :  { %v71_v34 = vadd.f32 %v70_v31, %v67_v32 }
 0x1ca   :  { %v73_v35 = vsub.f32 %v71_v34, %v72_v33 }
 0x1cc   :  { %v74_v36 = vsel %vm16_vm1, %v73_v35, 0.0 }
 0x1cd   :  { %v75_v37 = vrot.slane %v74_v36, 4 }
 0x1cf   :  { %v76_v38 = vadd.f32 %v75_v37, %v74_v36 }
 0x1d1   :  { %v77_v39 = vrot.slane %v76_v38, 2 }
 0x1d3   :  { %v78_v40 = vadd.f32 %v77_v39, %v76_v38 }
 0x1d5   :  { %v79_v41 = vrot.slane %v78_v40, 1 }
 0x1d7   :  { %v80_v42 = vadd.f32 %v79_v41, %v78_v40 }
 0x1d9   :  { %83 = vperm.xlu1 %106, %v80_v42  }
 0x258   :  { %v84_v43 = vpop.permute.xlu1 %83 }
 0x259   :  { %86 = vst [vmem:[#allocation5] sm:$0xff] %v84_v43 }
 0x25a   :  { %124 = shalt.err (!%p121_p4)
}
 0x25b   :  { %s125_s16 = scalar_lea.hbm %s186_s2, 128 }
 0x25c   :  { %p126_p5 = scmp.ne.s32.totalorder %s186_s2, %s125_s16  ;;  %p129_p6 = scmp.lt.u32.totalorder %s125_s16, %s186_s2 }
 0x25e   :  { %p131_p7 = pnand %p129_p6, %p126_p5 }
 0x260   :  { %134 = shalt.err (!%p131_p7)
}
 0x261   :  { %96 = dma.vmem_to_hbm [thread:$0]  %s94_s1, 128, %s186_s2, [#allocation6]  }
 0x262   :  { %135 = dma.done.wait [#allocation6], 128  }
 0x263   :  { %136 = vsyncadd [#allocation6], 4294967168 }
 0x264   :  { %100 = vsyncpa [#allocation6], 1 }

</bundles_post_ra>
